<compile_context>
chip_gen: v7x
topology: tpu7x:2x2x1
jax: 0.10.0
libtpu: 0.0.40
codegen_flags: <defaults>
</compile_context>

<pallas_src>
import jax
import jax.numpy as jnp
from jax.experimental import pallas as pl
from jax.experimental.pallas import tpu as pltpu


def xor_mlp_kernel(params_ref, x_ref, o_ref):
    """params_ref: SMEM f32[9] = [W1_00, W1_01, W1_10, W1_11, b1_0, b1_1,
                                  W2_00, W2_01, b2_0]   (PyTorch (out,in) order)
       x_ref:      VMEM f32[2, tr, C]  (feature-major; batch dense on sublane+lane)
       o_ref:      VMEM f32[tr, C]     (dense output slab)
    """
    x0 = x_ref[0]                          # (tr, C)
    x1 = x_ref[1]                          # (tr, C)

    w1_00 = params_ref[0]
    w1_01 = params_ref[1]
    w1_10 = params_ref[2]
    w1_11 = params_ref[3]
    b1_0 = params_ref[4]
    b1_1 = params_ref[5]
    w2_00 = params_ref[6]
    w2_01 = params_ref[7]
    b2_0 = params_ref[8]

    # Layer 1: h_j = relu(sum_i W1[j, i] * x_i + b1[j])  -- pure VPU FMAs.
    h0 = jnp.maximum(w1_00 * x0 + w1_01 * x1 + b1_0, 0.0)
    h1 = jnp.maximum(w1_10 * x0 + w1_11 * x1 + b1_1, 0.0)

    # Layer 2: y = relu(W2[0,0]*h0 + W2[0,1]*h1 + b2[0])
    o_ref[...] = jnp.maximum(w2_00 * h0 + w2_01 * h1 + b2_0, 0.0)


def _layout(B, *, lanes=512, max_block_rows=512):
    """Pick a dense batch slab (R, C) with R*C >= B, a row tile tr, and #blocks.

    - Tiny batches: one (r_raw, C) block whose dims equal the full array dims
      (allowed by the (8,128) rule), so B=8 only pads to 128 samples.
    - Large batches: tr is a multiple of 8, capped at max_block_rows (~2 MiB
      input block at C=512), chosen to yield ~8+ blocks for megacore balance.
    """
    C = 128 if B <= 1024 else lanes
    r_raw = pl.cdiv(B, C)
    if r_raw <= 8:
        return r_raw, C, r_raw, 1
    tr = min(max_block_rows, max(8, ((pl.cdiv(r_raw, 8) + 7) // 8) * 8))
    R = pl.cdiv(r_raw, tr) * tr
    return R, C, tr, R // tr


def xor_model_forward(x, w1_pt, b1_pt, w2_pt, b2_pt, *,
                      lanes=512, max_block_rows=512):
    """Forward pass matching PyTorch XORModel.

    x:     (B, 2) f32
    w1_pt: (2, 2) f32  -- nn.Linear(2, 2).weight  (out, in)
    b1_pt: (2,)   f32  -- nn.Linear(2, 2).bias
    w2_pt: (1, 2) f32  -- nn.Linear(2, 1).weight  (out, in)
    b2_pt: (1,)   f32  -- nn.Linear(2, 1).bias
    returns (B, 1) f32
    """
    B = x.shape[0]

    # Pack every parameter scalar into a single SMEM buffer (one tiny copy).
    params = jnp.concatenate(
        [w1_pt.reshape(-1), b1_pt.reshape(-1),
         w2_pt.reshape(-1), b2_pt.reshape(-1)]
    ).astype(jnp.float32)                                    # (9,)

    R, C, tr, n_blocks = _layout(B, lanes=lanes, max_block_rows=max_block_rows)
    b_pad = R * C

    # Dense (8,128)-aligned batch slab: (B,2) -> pad -> (2, R, C) feature-major.
    xp = jnp.pad(x.astype(jnp.float32), ((0, b_pad - B), (0, 0)))   # (b_pad, 2)
    xt = xp.reshape(R, C, 2).transpose(2, 0, 1)                     # (2, R, C)

    out = pl.pallas_call(
        xor_mlp_kernel,
        out_shape=jax.ShapeDtypeStruct((R, C), jnp.float32),
        grid=(n_blocks,),
        in_specs=[
            # Whole packed-param vector lives in SMEM; constant block index.
            pl.BlockSpec(memory_space=pltpu.MemorySpace.SMEM),
            # Row-tiled, fully dense activation block.
            pl.BlockSpec((2, tr, C), lambda i: (0, i, 0)),
        ],
        out_specs=pl.BlockSpec((tr, C), lambda i: (i, 0)),
        compiler_params=pltpu.CompilerParams(
            dimension_semantics=("parallel",),   # v7x: shard row blocks across TCs
        ),
    )(params, xt)

    # Back to the PyTorch-facing (B, 1) layout (contiguous reshape + slice).
    return out.reshape(-1)[:B].reshape(B, 1)


def _reference(x, w1_pt, b1_pt, w2_pt, b2_pt):
    h = jnp.maximum(x @ w1_pt.T + b1_pt, 0.0)
    return jnp.maximum(h @ w2_pt.T + b2_pt, 0.0)


if __name__ == "__main__":
    key = jax.random.PRNGKey(0)
    k_x, k_w1, k_b1, k_w2, k_b2, k_x2 = jax.random.split(key, 6)

    # Deterministic parameter init matching nn.Linear shapes:
    #   linear1.weight: (2, 2), linear1.bias: (2,)
    #   linear2.weight: (1, 2), linear2.bias: (1,)
    w1_pt = jax.random.normal(k_w1, (2, 2), dtype=jnp.float32) * 0.5  # (out, in)
    b1_pt = jax.random.normal(k_b1, (2,), dtype=jnp.float32) * 0.5
    w2_pt = jax.random.normal(k_w2, (1, 2), dtype=jnp.float32) * 0.5  # (out, in)
    b2_pt = jax.random.normal(k_b2, (1,), dtype=jnp.float32) * 0.5

    # Small batch (single tiny block path).
    B = 8
    x = jax.random.normal(k_x, (B, 2), dtype=jnp.float32)
    out = jax.block_until_ready(xor_model_forward(x, w1_pt, b1_pt, w2_pt, b2_pt))
    ref = _reference(x, w1_pt, b1_pt, w2_pt, b2_pt)
    assert out.shape == (B, 1)
    assert jnp.allclose(out, ref, atol=1e-5, rtol=1e-5)

    # Larger batch (multi-block, row-tiled path).
    B2 = 5000
    x2 = jax.random.normal(k_x2, (B2, 2), dtype=jnp.float32)
    out2 = jax.block_until_ready(xor_model_forward(x2, w1_pt, b1_pt, w2_pt, b2_pt))
    ref2 = _reference(x2, w1_pt, b1_pt, w2_pt, b2_pt)
    assert out2.shape == (B2, 1)
    assert jnp.allclose(out2, ref2, atol=1e-5, rtol=1e-5)

    print("KERNEL_OK")
</pallas_src>

<mosaic_0001>
module attributes {stable_mosaic.version = 11 : i64} {
  func.func @xor_mlp_kernel(%arg0: i32, %arg1: memref<9xf32, #tpu.memory_space<smem>>, %arg2: memref<2x1x128xf32, #tpu.memory_space<vmem>>, %arg3: memref<1x128xf32, #tpu.memory_space<vmem>>) attributes {dimension_semantics = [#tpu.dimension_semantics<parallel>], iteration_bounds = array<i64: 1>, scalar_prefetch = 0 : i64, scratch_operands = 0 : i64, tpu.core_type = #tpu.core_type<tc>, window_params = [{transform_indices = @transform_0, window_bounds = array<i64: 9>}, {transform_indices = @transform_1, window_bounds = array<i64: 2, 1, 128>}, {transform_indices = @transform_2, window_bounds = array<i64: 1, 128>}]} {
    %c0 = arith.constant 0 : index
    %c0_0 = arith.constant 0 : index
    %c0_1 = arith.constant 0 : index
    %0 = vector.load %arg2[%c0, %c0_0, %c0_1] : memref<2x1x128xf32, #tpu.memory_space<vmem>>, vector<1x1x128xf32>
    %1 = vector.shape_cast %0 : vector<1x1x128xf32> to vector<1x128xf32>
    %c1 = arith.constant 1 : index
    %c0_2 = arith.constant 0 : index
    %c0_3 = arith.constant 0 : index
    %2 = vector.load %arg2[%c1, %c0_2, %c0_3] : memref<2x1x128xf32, #tpu.memory_space<vmem>>, vector<1x1x128xf32>
    %3 = vector.shape_cast %2 : vector<1x1x128xf32> to vector<1x128xf32>
    %c0_4 = arith.constant 0 : index
    %4 = memref.load %arg1[%c0_4] : memref<9xf32, #tpu.memory_space<smem>>
    %c1_5 = arith.constant 1 : index
    %5 = memref.load %arg1[%c1_5] : memref<9xf32, #tpu.memory_space<smem>>
    %c2 = arith.constant 2 : index
    %6 = memref.load %arg1[%c2] : memref<9xf32, #tpu.memory_space<smem>>
    %c3 = arith.constant 3 : index
    %7 = memref.load %arg1[%c3] : memref<9xf32, #tpu.memory_space<smem>>
    %c4 = arith.constant 4 : index
    %8 = memref.load %arg1[%c4] : memref<9xf32, #tpu.memory_space<smem>>
    %c5 = arith.constant 5 : index
    %9 = memref.load %arg1[%c5] : memref<9xf32, #tpu.memory_space<smem>>
    %c6 = arith.constant 6 : index
    %10 = memref.load %arg1[%c6] : memref<9xf32, #tpu.memory_space<smem>>
    %c7 = arith.constant 7 : index
    %11 = memref.load %arg1[%c7] : memref<9xf32, #tpu.memory_space<smem>>
    %c8 = arith.constant 8 : index
    %12 = memref.load %arg1[%c8] : memref<9xf32, #tpu.memory_space<smem>>
    %13 = vector.broadcast %4 : f32 to vector<1x128xf32>
    %14 = arith.mulf %13, %1 : vector<1x128xf32>
    %15 = vector.broadcast %5 : f32 to vector<1x128xf32>
    %16 = arith.mulf %15, %3 : vector<1x128xf32>
    %17 = arith.addf %14, %16 : vector<1x128xf32>
    %18 = vector.broadcast %8 : f32 to vector<1x128xf32>
    %19 = arith.addf %17, %18 : vector<1x128xf32>
    %cst = arith.constant 0.000000e+00 : f32
    %20 = vector.broadcast %cst : f32 to vector<1x128xf32>
    %21 = arith.maximumf %19, %20 : vector<1x128xf32>
    %22 = vector.broadcast %6 : f32 to vector<1x128xf32>
    %23 = arith.mulf %22, %1 : vector<1x128xf32>
    %24 = vector.broadcast %7 : f32 to vector<1x128xf32>
    %25 = arith.mulf %24, %3 : vector<1x128xf32>
    %26 = arith.addf %23, %25 : vector<1x128xf32>
    %27 = vector.broadcast %9 : f32 to vector<1x128xf32>
    %28 = arith.addf %26, %27 : vector<1x128xf32>
    %cst_6 = arith.constant 0.000000e+00 : f32
    %29 = vector.broadcast %cst_6 : f32 to vector<1x128xf32>
    %30 = arith.maximumf %28, %29 : vector<1x128xf32>
    %31 = vector.broadcast %10 : f32 to vector<1x128xf32>
    %32 = arith.mulf %31, %21 : vector<1x128xf32>
    %33 = vector.broadcast %11 : f32 to vector<1x128xf32>
    %34 = arith.mulf %33, %30 : vector<1x128xf32>
    %35 = arith.addf %32, %34 : vector<1x128xf32>
    %36 = vector.broadcast %12 : f32 to vector<1x128xf32>
    %37 = arith.addf %35, %36 : vector<1x128xf32>
    %cst_7 = arith.constant 0.000000e+00 : f32
    %38 = vector.broadcast %cst_7 : f32 to vector<1x128xf32>
    %39 = arith.maximumf %37, %38 : vector<1x128xf32>
    %c0_8 = arith.constant 0 : index
    %c0_9 = arith.constant 0 : index
    %40 = vector.load %arg3[%c0_8, %c0_9] : memref<1x128xf32, #tpu.memory_space<vmem>>, vector<1x128xf32>
    tpu.vector_store %arg3[%c0_8, %c0_9], %39 {strides = array<i32>} : memref<1x128xf32, #tpu.memory_space<vmem>>, vector<1x128xf32>,
    return
  }
  func.func @transform_0(%arg0: i32) -> i32 {
    %c0_i32 = arith.constant 0 : i32
    %c0_i32_0 = arith.constant 0 : i32
    return %c0_i32 : i32
  }
  func.func @transform_1(%arg0: i32) -> (i32, i32, i32) {
    %c0_i32 = arith.constant 0 : i32
    %c0_i32_0 = arith.constant 0 : i32
    %c0_i32_1 = arith.constant 0 : i32
    return %c0_i32, %arg0, %c0_i32_0 : i32, i32, i32
  }
  func.func @transform_2(%arg0: i32) -> (i32, i32) {
    %c0_i32 = arith.constant 0 : i32
    %c0_i32_0 = arith.constant 0 : i32
    return %arg0, %c0_i32 : i32, i32
  }
}

</mosaic_0001>

<bundles_post_ra>
// kernel: tpu_custom_call.1
= control target key start
LH: loop header
LB: loop body
LE: loop exit
PB: predicated region body
PF: predicated region fallthrough
CT: control target
= control target key end

     0   :  { %7 = vsyncpa [#allocation4], 0  ;;  %s169_s0 = inlined_call_operand.hbm [shape: f32[9], index: 0, kind: input, shape index: {}]   ;;  %s170_s1 = inlined_call_operand.vmem [shape: f32[2,1,128], index: 1, kind: input, shape index: {}]   ;;  %s171_s2 = inlined_call_operand.hbm [shape: f32[1,128], index: 2, kind: output, shape index: {}]  }
   0x1   :  { %8 = vsyncpa [#allocation3], 0  ;;  %s86_s11 = scalar_lea.hbm %s169_s0, 16 }
   0x2   :  { %p87_p0 = scmp.ne.s32.totalorder %s169_s0, %s86_s11  ;;  %p90_p1 = scmp.lt.u32.totalorder %s86_s11, %s169_s0 }
   0x4   :  { %p92_p2 = pnand %p90_p1, %p87_p0 }
   0x6   :  { %95 = shalt.err (!%p92_p2)
}
   0x7   :  { %s122_s16 = smov [#allocation2]  }
   0x8   :  { %16 = dma.hbm_to_smem %s169_s0, 16, %s122_s16, [#allocation4]  }
   0x9   :  { %118 = dma.done.wait [#allocation4], 16  }
   0xa   :  { %119 = vsyncadd [#allocation4], 4294967280 }
   0xb   :  { %22 = sfence }
   0xc   :  { %s26_s19 = sld [smem:[#allocation2]]  ;;  %s76_s20 = sld [smem:[#allocation2 + $0x1]]  ;;  %v23_v0 = vld [vmem:[%s170_s1] sm:$0x1]  ;;  %v75_v1 = vld [vmem:[%s170_s1 + $0x1] sm:$0x1] }
   0xd   :  { %s77_s21 = sld [smem:[#allocation2 + $0x2]]  ;;  %s78_s22 = sld [smem:[#allocation2 + $0x3]] }
   0xe   :  { %s79_s23 = sld [smem:[#allocation2 + $0x4]]  ;;  %s80_s24 = sld [smem:[#allocation2 + $0x5]] }
   0xf   :  { %s81_s29 = sld [smem:[#allocation2 + $0x6]]  ;;  %s82_s30 = sld [smem:[#allocation2 + $0x7]] }
  0x10   :  { %s83_s0 = sld [smem:[#allocation2 + $0x8]]  ;;  %s123_s1 = smov [#allocation5]  }
  0x11   :  { %s66_s3 = sshll.u32 %s123_s1, 4  ;;  %s67_s3 = int_to_ptr.vmem [resolvable:$true] %s66_s3 }
  0x12   :  { %v35_v2 = vstv %s26_s19  ;;  %v37_v4 = vstv %s76_s20  ;;  %s96_s4 = scalar_lea.vmem %s67_s3, 16  ;;  %s100_s5 = scalar_lea.vmem %s67_s3, 32 }
  0x13   :  { %v36_v3 = vmul.f32 %v35_v2, %v23_v0  ;;  %v43_v5 = vstv %s77_s21  ;;  %v38_v6 = vmul.f32 %v75_v1, %v37_v4  ;;  %v45_v8 = vstv %s78_s22  ;;  %p97_p3 = scmp.ne.s32.totalorder %s67_s3, %s96_s4  ;;  %p101_p4 = scmp.lt.s32.totalorder %s67_s3, %s67_s3 }
  0x14   :  { %v44_v7 = vmul.f32 %v43_v5, %v23_v0  ;;  %v40_v9 = vstv %s79_s23  ;;  %v46_v10 = vmul.f32 %v75_v1, %v45_v8  ;;  %v48_v12 = vstv %s80_s24  ;;  %p102_p5 = scmp.lt.s32.totalorder %s100_s5, %s96_s4 }
  0x15   :  { %v39_v11 = vadd.f32 %v38_v6, %v36_v3  ;;  %v51_v16 = vstv %s81_s29  ;;  %v53_v18 = vstv %s82_s30 }
  0x16   :  { %v47_v13 = vadd.f32 %v46_v10, %v44_v7  ;;  %v56_v22 = vstv %s83_s0  ;;  %p103_p6 = por %p102_p5, %p101_p4 }
  0x17   :  { %v41_v14 = vadd.f32 %v40_v9, %v39_v11 }
  0x18   :  { %v49_v15 = vadd.f32 %v48_v12, %v47_v13  ;;  %p104_p7 = pnand %p103_p6, %p97_p3 }
  0x19   :  { %v42_v17 = vmax.f32 %v41_v14, 0.0 }
  0x1a   :  { %v50_v19 = vmax.f32 %v49_v15, 0.0 }
  0x1b   :  { %v52_v20 = vmul.f32 %v51_v16, %v42_v17 }
  0x1c   :  { %v54_v21 = vmul.f32 %v53_v18, %v50_v19 }
  0x1e   :  { %v55_v23 = vadd.f32 %v54_v21, %v52_v20 }
  0x20   :  { %v57_v24 = vadd.f32 %v56_v22, %v55_v23 }
  0x22   :  { %v58_v25 = vmax.f32 %v57_v24, 0.0 }
  0x24   :  { %59 = vst [vmem:[#allocation5] sm:$0x1] %v58_v25 }
  0x25   :  { %107 = shalt.err (!%p104_p7)
}
  0x26   :  { %s108_s8 = scalar_lea.hbm %s171_s2, 16 }
  0x27   :  { %p109_p8 = scmp.ne.s32.totalorder %s171_s2, %s108_s8  ;;  %p112_p9 = scmp.lt.u32.totalorder %s108_s8, %s171_s2 }
  0x29   :  { %p114_p10 = pnand %p112_p9, %p109_p8 }
  0x2b   :  { %117 = shalt.err (!%p114_p10)
}
  0x2c   :  { %69 = dma.vmem_to_hbm [thread:$0]  %s67_s3, 16, %s171_s2, [#allocation3]  }
  0x2d   :  { %120 = dma.done.wait [#allocation3], 16  }
  0x2e   :  { %121 = vsyncadd [#allocation3], 4294967280 }
  0x2f   :  { %73 = vsyncpa [#allocation3], 1 }
  0x30   :  { %74 = vsyncpa [#allocation4], 1 }

</bundles_post_ra>
